<compile_context>
chip_gen: v6e
topology: v6e:2x2x1
jax: 0.10.0
libtpu: 0.0.40
codegen_flags: <defaults>
</compile_context>

<pallas_src>
import functools

import jax
import jax.numpy as jnp
from jax.experimental import pallas as pl
from jax.experimental.pallas import tpu as pltpu


def _round_up(x, m):
    return (x + m - 1) // m * m


def _selection_kernel(feat_ref, vec_ref, out_ref):
    # feat_ref: (TB, N, M)  batch tile of features
    # vec_ref : (1, 1, M)   resident selection vector (constant index_map)
    # out_ref : (TB, 2N)
    prod = feat_ref[...].astype(jnp.float32) * vec_ref[...].astype(jnp.float32)
    fwd = jnp.sum(prod, axis=-1)                    # (TB, N), f32 accumulate
    fwd = fwd.astype(out_ref.dtype)
    out_ref[...] = jnp.concatenate([fwd, -fwd], axis=-1)   # (TB, 2N)


def simple_serial_selection(
    features,
    selection_vector,
    *,
    asset_num,
    hidden_dim,
    vmem_input_budget_bytes=24 << 20,
):
    """features: any shape whose trailing size flattens to asset_num*hidden_dim
    per row; selection_vector: (1, hidden_dim).  Returns (B, 2*asset_num)."""
    N, M = asset_num, hidden_dim
    feat = features.reshape(-1, N, M)          # free: same contiguous layout
    B = feat.shape[0]
    dtype = feat.dtype
    vec = selection_vector.reshape(1, 1, M).astype(dtype)

    # Budget-driven batch tile.  Account for (8,128) VMEM tile padding of the
    # last two dims and double-buffered input pipelining.
    itemsize = jnp.dtype(dtype).itemsize
    per_row_bytes = _round_up(N, 8) * _round_up(M, 128) * itemsize
    tb_budget = max(8, vmem_input_budget_bytes // (2 * per_row_bytes))

    if B <= tb_budget:
        # Single block: block dims equal the full array dims (always legal).
        tb = B
    else:
        # Multi-block: TB must be sublane-aligned (it is the second-to-last
        # dim of the 2-D output block).  Partial last block is masked by
        # Pallas -> no jnp.pad of the feature array, no extra HBM traffic.
        tb = max(8, (tb_budget // 8) * 8)
    grid = (pl.cdiv(B, tb),)

    out = pl.pallas_call(
        _selection_kernel,
        out_shape=jax.ShapeDtypeStruct((B, 2 * N), dtype),
        grid_spec=pltpu.PrefetchScalarGridSpec(
            num_scalar_prefetch=0,
            grid=grid,
            in_specs=[
                pl.BlockSpec((tb, N, M), lambda b: (b, 0, 0)),
                # constant index_map -> vec DMA'd once, stays resident in VMEM
                pl.BlockSpec((1, 1, M), lambda b: (0, 0, 0)),
            ],
            out_specs=pl.BlockSpec((tb, 2 * N), lambda b: (b, 0)),
        ),
        compiler_params=pltpu.CompilerParams(
            dimension_semantics=("parallel",),
            # Explicit limit: well under v7x's 64 MiB physical, unlocks bigger
            # tiles than v5e's 16 MiB / v6e's 32 MiB scoped defaults.
            vmem_limit_bytes=48 << 20,
        ),
    )(feat, vec)

    return out


def reference(features, selection_vector, *, asset_num, hidden_dim):
    feat = features.reshape(-1, asset_num, hidden_dim)
    fwd = jnp.einsum("bnm,m->bn", feat, selection_vector[0])
    return jnp.concatenate([fwd, -fwd], axis=1)


if __name__ == "__main__":
    asset_num = 8
    hidden_dim = 32
    feature_dim = asset_num * hidden_dim  # N x M

    key = jax.random.PRNGKey(0)
    k_feat, k_vec, k_feat2 = jax.random.split(key, 3)

    # Deterministic stand-in for the nn.Parameter selection_vector: (1, hidden_dim).
    selection_vector = jax.random.normal(k_vec, (1, hidden_dim), dtype=jnp.float32)

    # --- main check: small module-consistent shapes (single full block) ---
    batch = 2
    features = jax.random.normal(k_feat, (batch, feature_dim), dtype=jnp.float32)
    out = simple_serial_selection(
        features, selection_vector, asset_num=asset_num, hidden_dim=hidden_dim
    )
    out = jax.block_until_ready(out)
    ref = reference(
        features, selection_vector, asset_num=asset_num, hidden_dim=hidden_dim
    )
    assert out.shape == (batch, 2 * asset_num), out.shape
    assert jnp.allclose(out, ref, atol=1e-5, rtol=1e-5), "mismatch vs reference"

    # --- secondary check: force multi-block grid with a partial last block
    #     (exercises the no-pad / masked-tail path) ---
    batch2 = 20
    features2 = jax.random.normal(k_feat2, (batch2, feature_dim), dtype=jnp.float32)
    out2 = simple_serial_selection(
        features2,
        selection_vector,
        asset_num=asset_num,
        hidden_dim=hidden_dim,
        vmem_input_budget_bytes=2 * 8 * 8 * 128 * 4,  # forces TB=8 -> grid=(3,), tail=4
    )
    out2 = jax.block_until_ready(out2)
    ref2 = reference(
        features2, selection_vector, asset_num=asset_num, hidden_dim=hidden_dim
    )
    assert out2.shape == (batch2, 2 * asset_num), out2.shape
    assert jnp.allclose(out2, ref2, atol=1e-5, rtol=1e-5), "mismatch vs reference (tiled)"

    print("KERNEL_OK")
</pallas_src>

<mosaic_0001>
module attributes {stable_mosaic.version = 11 : i64} {
  func.func @_selection_kernel(%arg0: i32, %arg1: memref<2x8x32xf32, #tpu.memory_space<vmem>>, %arg2: memref<1x1x32xf32, #tpu.memory_space<vmem>>, %arg3: memref<2x16xf32, #tpu.memory_space<vmem>>) attributes {dimension_semantics = [#tpu.dimension_semantics<parallel>], iteration_bounds = array<i64: 1>, scalar_prefetch = 0 : i64, scratch_operands = 0 : i64, tpu.core_type = #tpu.core_type<tc>, window_params = [{transform_indices = @transform_0, window_bounds = array<i64: 2, 8, 32>}, {pipeline_mode = #tpu.pipeline_mode<synchronous>, transform_indices = @transform_1, window_bounds = array<i64: 1, 1, 32>}, {transform_indices = @transform_2, window_bounds = array<i64: 2, 16>}]} {
    %c0 = arith.constant 0 : index
    %c0_0 = arith.constant 0 : index
    %c0_1 = arith.constant 0 : index
    %0 = vector.load %arg1[%c0, %c0_0, %c0_1] : memref<2x8x32xf32, #tpu.memory_space<vmem>>, vector<2x8x32xf32>
    %c0_2 = arith.constant 0 : index
    %c0_3 = arith.constant 0 : index
    %c0_4 = arith.constant 0 : index
    %1 = vector.load %arg2[%c0_2, %c0_3, %c0_4] : memref<1x1x32xf32, #tpu.memory_space<vmem>>, vector<1x1x32xf32>
    %2 = vector.broadcast %1 : vector<1x1x32xf32> to vector<2x8x32xf32>
    %3 = arith.mulf %0, %2 : vector<2x8x32xf32>
    %cst = arith.constant dense<0.000000e+00> : vector<2x8xf32>
    %4 = vector.multi_reduction <add>, %3, %cst [2] : vector<2x8x32xf32> to vector<2x8xf32>
    %cst_5 = arith.constant 0.000000e+00 : f32
    %5 = vector.broadcast %cst_5 : f32 to vector<2x8xf32>
    %6 = arith.subf %5, %4 : vector<2x8xf32>
    %7 = tpu.concatenate %4, %6 in 1 : vector<2x8xf32>, vector<2x8xf32> -> vector<2x16xf32>
    %c0_6 = arith.constant 0 : index
    %c0_7 = arith.constant 0 : index
    %8 = vector.load %arg3[%c0_6, %c0_7] : memref<2x16xf32, #tpu.memory_space<vmem>>, vector<2x16xf32>
    tpu.vector_store %arg3[%c0_6, %c0_7], %7 {strides = array<i32>} : memref<2x16xf32, #tpu.memory_space<vmem>>, vector<2x16xf32>,
    return
  }
  func.func @transform_0(%arg0: i32) -> (i32, i32, i32) {
    %c0_i32 = arith.constant 0 : i32
    %c0_i32_0 = arith.constant 0 : i32
    %c0_i32_1 = arith.constant 0 : i32
    return %arg0, %c0_i32, %c0_i32_0 : i32, i32, i32
  }
  func.func @transform_1(%arg0: i32) -> (i32, i32, i32) {
    %c0_i32 = arith.constant 0 : i32
    %c0_i32_0 = arith.constant 0 : i32
    %c0_i32_1 = arith.constant 0 : i32
    %c0_i32_2 = arith.constant 0 : i32
    return %c0_i32, %c0_i32_0, %c0_i32_1 : i32, i32, i32
  }
  func.func @transform_2(%arg0: i32) -> (i32, i32) {
    %c0_i32 = arith.constant 0 : i32
    %c0_i32_0 = arith.constant 0 : i32
    return %arg0, %c0_i32 : i32, i32
  }
}

</mosaic_0001>

<bundles_post_ra>
// kernel: tpu_custom_call.1
= control target key start
LH: loop header
LB: loop body
LE: loop exit
PB: predicated region body
PF: predicated region fallthrough
CT: control target
= control target key end

     0   :  { %7 = vsyncpa [#allocation3], 0  ;;  %s170_s0 = inlined_call_operand.hbm [shape: f32[2,8,32], index: 0, kind: input, shape index: {}]   ;;  %s171_s1 = inlined_call_operand.vmem [shape: f32[1,1,32], index: 1, kind: input, shape index: {}]   ;;  %s172_s2 = inlined_call_operand.hbm [shape: f32[2,16], index: 2, kind: output, shape index: {}]  }
   0x1   :  { %8 = vsyncpa [#allocation4], 0  ;;  %s142_s9 = smov [#allocation2]  }
   0x2   :  { %s14_s10 = sshll.u32 %s142_s9, 4  ;;  %s15_s10 = int_to_ptr.vmem [resolvable:$true] %s14_s10 }
   0x3   :  { %s106_s11 = scalar_lea.vmem %s15_s10, 256  ;;  %p111_p1 = scmp.lt.s32.totalorder %s15_s10, %s15_s10 }
   0x4   :  { %p107_p0 = scmp.ne.s32.totalorder %s15_s10, %s106_s11  ;;  %p112_p2 = scmp.lt.s32.totalorder %s106_s11, %s106_s11 }
   0x6   :  { %p113_p3 = por %p112_p2, %p111_p1 }
   0x8   :  { %p114_p4 = pnand %p113_p3, %p107_p0 }
   0xa   :  { %117 = shalt.err (!%p114_p4)
}
   0xb   :  { %s143_s12 = smov 128   ;;  %s144_s13 = smov 8  }
   0xc   :  { %20 = dma.hbm_to_vmem [thread:$0]  %s170_s0, 256, %s15_s10, [#allocation3], %s143_s12, %s143_s12, %s144_s13  }
   0xd   :  { %138 = dma.done.wait [#allocation3], 256  }
   0xe   :  { %139 = vsyncadd [#allocation3], 4294967040  ;;  %v26_v0 = vld [vmem:[#allocation2] sm:$0xff]  ;;  %vm37_vm0 = vcmask 261120   ;;  %v27_v2 = vld [vmem:[#allocation2 + $0x8] sm:$0xff]  ;;  %v48_v7 = vlaneseq  ;;  %vm58_vm1 = vcmask 1041409  }
   0xf   :  { %v93_v1 = vld [vmem:[%s171_s1] ss:$0 sm:$0xff]  ;;  %s145_s0 = smov [#allocation5]   ;;  %vm74_vm2 = vcmask 64512   ;;  %vm76_vm3 = vcmask 123904  }
  0x10   :  { %v35_v3 = vmul.f32 %v93_v1, %v26_v0  ;;  %v36_v4 = vmul.f32 %v93_v1, %v27_v2  ;;  %v49_v8 = vand.u32 127, %v48_v7  ;;  %v51_v9 = vshrl.u32 %v48_v7, 7  ;;  %s84_s1 = sshll.u32 %s145_s0, 4  ;;  %s85_s1 = int_to_ptr.vmem [resolvable:$true] %s84_s1 }
  0x11   :  { %s118_s18 = scalar_lea.vmem %s85_s1, 32  ;;  %p123_p6 = scmp.lt.s32.totalorder %s85_s1, %s85_s1 }
  0x12   :  { %v38_v5 = vsel %vm37_vm0, %v35_v3, 0.0  ;;  %v41_v6 = vsel %vm37_vm0, %v36_v4, 0.0  ;;  %v63_v10 = vadd.s32 4294967288, %v49_v8  ;;  %v52_v12 = vsub.s32 %v49_v8, %v51_v9  ;;  %p119_p5 = scmp.ne.s32.totalorder %s85_s1, %s118_s18  ;;  %p124_p7 = scmp.lt.s32.totalorder %s118_s18, %s118_s18 }
  0x13   :  { %39 = vadd.xlane.f32.xlu0 %v38_v5 }
  0x14   :  { %v66_v13 = vsub.s32 %v63_v10, %v51_v9  ;;  %p125_p8 = por %p124_p7, %p123_p6 }
  0x16   :  { %p126_p9 = pnand %p125_p8, %p119_p5 }
  0x17   :  { %42 = vadd.xlane.f32.xlu0 %v41_v6 }
  0x9c   :  { %v40_v11 = vpop.xlane.xlu0 %39 }
  0x9d   :  { %v44_v14 = vsub.f32 0.0, %v40_v11  ;;  %v53_v18 = vrot.slane %v40_v11, %v52_v12 }
  0x9f   :  { %v67_v19 = vrot.slane %v44_v14, %v66_v13 }
  0xa0   :  { %v43_v15 = vpop.xlane.xlu0 %42 }
  0xa1   :  { %v45_v16 = vsub.f32 0.0, %v43_v15  ;;  %v57_v17 = vrot.slane %v43_v15, %v52_v12 }
  0xa3   :  { %v71_v20 = vrot.slane %v45_v16, %v66_v13  ;;  %v59_v21 = vsel %vm58_vm1, %v57_v17, %v53_v18 }
  0xa5   :  { %v72_v22 = vsel %vm58_vm1, %v71_v20, %v67_v19 }
  0xa6   :  { %v75_v23 = vsel %vm74_vm2, %v59_v21, %v72_v22 }
  0xa7   :  { %77 = vst.msk [vmem:[#allocation5] sm:$0x3] %vm76_vm3, %v75_v23 }
  0xa8   :  { %129 = shalt.err (!%p126_p9)
}
  0xa9   :  { %87 = dma.vmem_to_hbm [thread:$0]  %s85_s1, 32, %s172_s2, [#allocation4]  }
  0xaa   :  { %140 = dma.done.wait [#allocation4], 32  }
  0xab   :  { %141 = vsyncadd [#allocation4], 4294967264 }
  0xac   :  { %91 = vsyncpa [#allocation3], 1 }
  0xad   :  { %92 = vsyncpa [#allocation4], 1 }

</bundles_post_ra>
